<compile_context>
chip_gen: v7x
topology: tpu7x:2x2x1
jax: 0.10.0
libtpu: 0.0.40
codegen_flags: <defaults>
</compile_context>

<pallas_src>
import functools

import jax
import jax.numpy as jnp
from jax import lax
from jax.experimental import pallas as pl
from jax.experimental.pallas import tpu as pltpu


def _make_ce_kernel(n_total, tile_n):
    """Builds a kernel computing the partial CE-loss sum for one row tile."""

    def kernel(logits_ref, target_ref, partial_ref):
        # logits_ref: (tile_n, C) native dtype in VMEM
        # target_ref: (tile_n, 1) int32 in VMEM
        # partial_ref: (1, 1) f32 partial sum for this row tile
        x = logits_ref[...].astype(jnp.float32)          # (tile_n, C)
        tgt = target_ref[...]                            # (tile_n, 1) int32
        tn, c = x.shape

        # Numerically stable log-sum-exp over classes.
        m = jnp.max(x, axis=-1, keepdims=True)           # (tile_n, 1)
        xs = x - m                                       # reused below
        sum_exp = jnp.sum(jnp.exp(xs), axis=-1, keepdims=True)   # (tile_n, 1)

        # Gather logit at the target class via one-hot select on the shifted
        # values:  picked = picked_shift + m, and  lse = m + log(sum_exp),
        # so  lse - picked = log(sum_exp) - picked_shift  (m cancels).
        col_ids = lax.broadcasted_iota(jnp.int32, (tn, c), 1)
        picked_shift = jnp.sum(
            jnp.where(col_ids == tgt, xs, 0.0), axis=-1, keepdims=True)

        per_sample = jnp.log(sum_exp) - picked_shift     # (tile_n, 1)

        # Mask rows past the true N (partial last block).
        row_ids = (pl.program_id(0) * tile_n
                   + lax.broadcasted_iota(jnp.int32, (tn, 1), 0))
        per_sample = jnp.where(row_ids < n_total, per_sample, 0.0)

        partial_ref[...] = jnp.sum(per_sample).reshape(1, 1)

    return kernel


@functools.partial(jax.jit, static_argnames=("tile_n_override",))
def cross_entropy_loss(y_pred, target, tile_n_override=None):
    """Pallas TPU equivalent of nn.CrossEntropyLoss()(y_pred, target).

    y_pred: (N, C) float logits (any float dtype; streamed natively)
    target: (N,) int class indices
    returns: scalar float32 mean loss
    """
    n, c = y_pred.shape
    target_2d = target.astype(jnp.int32).reshape(n, 1)

    # Pick a row-tile size: ~4 MiB of logits per buffer (double-buffered by
    # the pipeline) so it fits every generation's default scoped VMEM.
    bytes_per_row = c * jnp.dtype(y_pred.dtype).itemsize
    tile_n = max(8, min(512, ((4 * 1024 * 1024) // max(1, bytes_per_row)) // 8 * 8))
    if tile_n_override is not None:
        tile_n = tile_n_override
    if n <= tile_n:
        tile_n = n                       # full dim: always a legal block
    grid_n = pl.cdiv(n, tile_n)

    cost = pl.CostEstimate(
        flops=6 * n * c,                          # cmp/sub/add/select work
        transcendentals=n * c + n,                # exp per element + log per row
        bytes_accessed=n * bytes_per_row + n * 4 + grid_n * 4,
    )

    partials = pl.pallas_call(
        _make_ce_kernel(n, tile_n),
        out_shape=jax.ShapeDtypeStruct((grid_n, 1), jnp.float32),
        grid=(grid_n,),
        in_specs=[
            pl.BlockSpec((tile_n, c), lambda i: (i, 0)),
            pl.BlockSpec((tile_n, 1), lambda i: (i, 0)),
        ],
        out_specs=pl.BlockSpec((1, 1), lambda i: (i, 0)),
        compiler_params=pltpu.CompilerParams(
            dimension_semantics=("parallel",)),
        cost_estimate=cost,
    )(y_pred, target_2d)

    return jnp.sum(partials) / jnp.float32(n)


def _reference_ce(y_pred, target):
    log_probs = jax.nn.log_softmax(y_pred.astype(jnp.float32), axis=-1)
    n = y_pred.shape[0]
    return -jnp.mean(log_probs[jnp.arange(n), target])


if __name__ == "__main__":
    key = jax.random.PRNGKey(0)
    k1, k2, k3, k4 = jax.random.split(key, 4)

    # Test 1: small shape matching the module's toy usage (single block).
    N, C = 8, 32
    y_pred = jax.random.normal(k1, (N, C), dtype=jnp.float32)
    target = jax.random.randint(k2, (N,), 0, C, dtype=jnp.int32)

    loss = cross_entropy_loss(y_pred, target)
    jax.block_until_ready(loss)
    ref = _reference_ce(y_pred, target)
    assert jnp.allclose(loss, ref, atol=1e-5, rtol=1e-5), (loss, ref)

    # Test 2: exercise the tiled/masked path (3 row tiles, ragged last tile).
    N2, C2 = 40, 48
    y_pred2 = jax.random.normal(k3, (N2, C2), dtype=jnp.float32)
    target2 = jax.random.randint(k4, (N2,), 0, C2, dtype=jnp.int32)

    loss2 = cross_entropy_loss(y_pred2, target2, tile_n_override=16)
    jax.block_until_ready(loss2)
    ref2 = _reference_ce(y_pred2, target2)
    assert jnp.allclose(loss2, ref2, atol=1e-5, rtol=1e-5), (loss2, ref2)

    print("KERNEL_OK")
</pallas_src>

<mosaic_0001>
module attributes {stable_mosaic.version = 11 : i64} {
  func.func @kernel(%arg0: i32, %arg1: memref<8x32xf32, #tpu.memory_space<vmem>>, %arg2: memref<8x1xi32, #tpu.memory_space<vmem>>, %arg3: memref<1x1xf32, #tpu.memory_space<vmem>>) attributes {dimension_semantics = [#tpu.dimension_semantics<parallel>], iteration_bounds = array<i64: 1>, scalar_prefetch = 0 : i64, scratch_operands = 0 : i64, tpu.core_type = #tpu.core_type<tc>, window_params = [{transform_indices = @transform_0, window_bounds = array<i64: 8, 32>}, {transform_indices = @transform_1, window_bounds = array<i64: 8, 1>}, {transform_indices = @transform_2, window_bounds = array<i64: 1, 1>}]} {
    %c0 = arith.constant 0 : index
    %c0_0 = arith.constant 0 : index
    %0 = vector.load %arg1[%c0, %c0_0] : memref<8x32xf32, #tpu.memory_space<vmem>>, vector<8x32xf32>
    %c0_1 = arith.constant 0 : index
    %c0_2 = arith.constant 0 : index
    %1 = vector.load %arg2[%c0_1, %c0_2] : memref<8x1xi32, #tpu.memory_space<vmem>>, vector<8x1xi32>
    %cst = arith.constant dense<0xFF800000> : vector<8xf32>
    %2 = vector.multi_reduction <maximumf>, %0, %cst [1] : vector<8x32xf32> to vector<8xf32>
    %3 = vector.shape_cast %2 : vector<8xf32> to vector<8x1xf32>
    %4 = vector.broadcast %3 : vector<8x1xf32> to vector<8x32xf32>
    %5 = arith.subf %0, %4 : vector<8x32xf32>
    %6 = math.exp %5 : vector<8x32xf32>
    %cst_3 = arith.constant dense<0.000000e+00> : vector<8xf32>
    %7 = vector.multi_reduction <add>, %6, %cst_3 [1] : vector<8x32xf32> to vector<8xf32>
    %8 = vector.shape_cast %7 : vector<8xf32> to vector<8x1xf32>
    %9 = tpu.iota {dimensions = array<i32: 1>} : vector<8x32xi32>
    %10 = vector.broadcast %1 : vector<8x1xi32> to vector<8x32xi32>
    %11 = arith.cmpi eq, %9, %10 : vector<8x32xi32>
    %cst_4 = arith.constant 0.000000e+00 : f32
    %12 = vector.broadcast %cst_4 : f32 to vector<8x32xf32>
    %13 = arith.select %11, %5, %12 : vector<8x32xi1>, vector<8x32xf32>
    %cst_5 = arith.constant dense<0.000000e+00> : vector<8xf32>
    %14 = vector.multi_reduction <add>, %13, %cst_5 [1] : vector<8x32xf32> to vector<8xf32>
    %15 = vector.shape_cast %14 : vector<8xf32> to vector<8x1xf32>
    %16 = math.log %8 : vector<8x1xf32>
    %17 = arith.subf %16, %15 : vector<8x1xf32>
    %c8_i32 = arith.constant 8 : i32
    %18 = arith.muli %arg0, %c8_i32 : i32
    %19 = tpu.iota {dimensions = array<i32: 0>} : vector<8x1xi32>
    %20 = vector.broadcast %18 : i32 to vector<8x1xi32>
    %21 = arith.addi %20, %19 : vector<8x1xi32>
    %c8_i32_6 = arith.constant 8 : i32
    %22 = vector.broadcast %c8_i32_6 : i32 to vector<8x1xi32>
    %23 = arith.cmpi slt, %21, %22 : vector<8x1xi32>
    %cst_7 = arith.constant 0.000000e+00 : f32
    %24 = vector.broadcast %cst_7 : f32 to vector<8x1xf32>
    %25 = arith.select %23, %17, %24 : vector<8x1xi1>, vector<8x1xf32>
    %26 = vector.shape_cast %25 : vector<8x1xf32> to vector<1x8x1xf32>
    %cst_8 = arith.constant dense<0.000000e+00> : vector<1xf32>
    %27 = vector.multi_reduction <add>, %26, %cst_8 [1, 2] : vector<1x8x1xf32> to vector<1xf32>
    %28 = vector.shape_cast %27 : vector<1xf32> to vector<1x1x1xf32>
    %29 = vector.extract %28[0, 0, 0] : f32 from vector<1x1x1xf32>
    %30 = vector.broadcast %29 : f32 to vector<1x1xf32>
    %c0_9 = arith.constant 0 : index
    %c0_10 = arith.constant 0 : index
    %31 = vector.load %arg3[%c0_9, %c0_10] : memref<1x1xf32, #tpu.memory_space<vmem>>, vector<1x1xf32>
    tpu.vector_store %arg3[%c0_9, %c0_10], %30 {strides = array<i32>} : memref<1x1xf32, #tpu.memory_space<vmem>>, vector<1x1xf32>,
    return
  }
  func.func @transform_0(%arg0: i32) -> (i32, i32) {
    %c0_i32 = arith.constant 0 : i32
    %c0_i32_0 = arith.constant 0 : i32
    return %arg0, %c0_i32 : i32, i32
  }
  func.func @transform_1(%arg0: i32) -> (i32, i32) {
    %c0_i32 = arith.constant 0 : i32
    %c0_i32_0 = arith.constant 0 : i32
    return %arg0, %c0_i32 : i32, i32
  }
  func.func @transform_2(%arg0: i32) -> (i32, i32) {
    %c0_i32 = arith.constant 0 : i32
    %c0_i32_0 = arith.constant 0 : i32
    return %arg0, %c0_i32 : i32, i32
  }
}

</mosaic_0001>

<bundles_post_ra>
// kernel: cross_entropy_loss.1
= control target key start
LH: loop header
LB: loop body
LE: loop exit
PB: predicated region body
PF: predicated region fallthrough
CT: control target
= control target key end

     0   :  { %vm14_vm0 = vcmask 261120   ;;  %s143_s0 = inlined_call_operand.vmem [shape: f32[8,32], index: 0, kind: input, shape index: {}]   ;;  %s144_s1 = inlined_call_operand.vmem [shape: s32[8,1], index: 1, kind: input, shape index: {}]   ;;  %s145_s2 = inlined_call_operand.hbm [shape: f32[1,1], index: 2, kind: output, shape index: {}]  }
   0x1   :  { %v12_v0 = vld [vmem:[%s143_s0] sm:$0xff] }
   0x2   :  { %7 = vsyncpa [#allocation3], 0  ;;  %v15_v1 = vsel %vm14_vm0, %v12_v0, -inf  ;;  %v105_v2 = vmov 0   ;;  %v13_v3 = vld [vmem:[%s144_s1] sm:$0xff]  ;;  %v24_v7 = vlaneseq  ;;  %vm44_vm2 = vcmask 7168  }
   0x3   :  { %76 = vset.pattern.permute.xlu0 %v105_v2  ;;  %s106_s0 = smov [#allocation2]   ;;  %vm56_vm3 = vcmask 0  }
   0x4   :  { %16 = vmax.xlane.f32.xlu0 %v15_v1  ;;  %v25_v8 = vand.u32 127, %v24_v7  ;;  %s64_s1 = sshll.u32 %s106_s0, 4  ;;  %s65_s1 = int_to_ptr.vmem [resolvable:$true] %s64_s1 }
   0x5   :  { %s81_s14 = scalar_lea.vmem %s65_s1, 16  ;;  %s85_s15 = scalar_lea.vmem %s65_s1, 32 }
   0x6   :  { %p82_p0 = scmp.ne.s32.totalorder %s65_s1, %s81_s14  ;;  %p86_p1 = scmp.lt.s32.totalorder %s65_s1, %s65_s1 }
   0x7   :  { %p87_p2 = scmp.lt.s32.totalorder %s85_s15, %s81_s14 }
   0x9   :  { %p88_p3 = por %p87_p2, %p86_p1 }
   0xb   :  { %p89_p4 = pnand %p88_p3, %p82_p0 }
  0x1a   :  { %27 = vperm.xlu0 %76, %v13_v3  }
  0x91   :  { %v17_v4 = vpop.xlane.xlu0 %16 }
  0x92   :  { %v18_v5 = vsub.f32 %v12_v0, %v17_v4 }
  0x94   :  { %v19_v6 = vmul.f32 1.442695, %v18_v5 }
  0x96   :  { %77 = vpow2.f32 %v19_v6 }
  0x99   :  { %v28_v9 = vpop.permute.xlu0 %27 }
  0x9a   :  { %vm29_vm1 = vcmp.eq.s32.totalorder %v25_v8, %v28_v9 }
  0x9b   :  { %v30_v12 = vsel %vm29_vm1, %v18_v5, 0.0 }
  0x9c   :  { %v31_v13 = vsel %vm14_vm0, %v30_v12, 0.0 }
  0xa0   :  { %v78_v10 = vpop.eup %77 }
  0xa1   :  { %v21_v11 = vsel %vm14_vm0, %v78_v10, 0.0 }
  0xa2   :  { %22 = vadd.xlane.f32.xlu1 %v21_v11 }
  0xa6   :  { %32 = vadd.xlane.f32.xlu1 %v31_v13 }
 0x12f   :  { %v23_v14 = vpop.xlane.xlu1 %22 }
 0x130   :  { %79 = vlog2.f32 %v23_v14 }
 0x133   :  { %v33_v17 = vpop.xlane.xlu1 %32 }
 0x13a   :  { %v80_v15 = vpop.eup %79 }
 0x13b   :  { %v35_v16 = vmul.f32 0.6931472, %v80_v15 }
 0x13d   :  { %v36_v18 = vsub.f32 %v35_v16, %v33_v17 }
 0x13f   :  { %v45_v19 = vsel %vm44_vm2, %v36_v18, 0.0 }
 0x140   :  { %46 = vadd.xlane.f32.xlu1 %v45_v19 }
 0x1cd   :  { %v47_v20 = vpop.xlane.xlu1 %46 }
 0x1ce   :  { %v48_v21 = vrot.slane %v47_v20, 4 }
 0x1d0   :  { %v49_v22 = vadd.f32 %v48_v21, %v47_v20 }
 0x1d2   :  { %v50_v23 = vrot.slane %v49_v22, 2 }
 0x1d4   :  { %v51_v24 = vadd.f32 %v50_v23, %v49_v22 }
 0x1d6   :  { %v52_v25 = vrot.slane %v51_v24, 1 }
 0x1d8   :  { %v53_v26 = vadd.f32 %v52_v25, %v51_v24 }
 0x1da   :  { %72 = vpush %v53_v26 }
 0x20b   :  { %s73_s13 = spop %72 }
 0x20c   :  { %v55_v27 = vstv %s73_s13 }
 0x20d   :  { %57 = vst.msk [vmem:[#allocation2] sm:$0x1] %vm56_vm3, %v55_v27 }
 0x20e   :  { %92 = shalt.err (!%p89_p4)
}
 0x20f   :  { %s93_s18 = scalar_lea.hbm %s145_s2, 16 }
 0x210   :  { %p94_p5 = scmp.ne.s32.totalorder %s145_s2, %s93_s18  ;;  %p97_p6 = scmp.lt.u32.totalorder %s93_s18, %s145_s2 }
 0x212   :  { %p99_p7 = pnand %p97_p6, %p94_p5 }
 0x214   :  { %102 = shalt.err (!%p99_p7)
}
 0x215   :  { %67 = dma.vmem_to_hbm [thread:$0]  %s65_s1, 16, %s145_s2, [#allocation3]  }
 0x216   :  { %103 = dma.done.wait [#allocation3], 16  }
 0x217   :  { %104 = vsyncadd [#allocation3], 4294967280 }
 0x218   :  { %71 = vsyncpa [#allocation3], 1 }

</bundles_post_ra>
